<compile_context>
chip_gen: v5e
topology: v5e:2x2
jax: 0.10.0
libtpu: 0.0.40
codegen_flags: <defaults>
</compile_context>

<pallas_src>
import functools

import numpy as np
import jax
import jax.numpy as jnp
from jax import lax
from jax.experimental import pallas as pl
from jax.experimental.pallas import tpu as pltpu


# ----------------------------------------------------------------------------
# Parameter / filter construction (host-side, deterministic)
# ----------------------------------------------------------------------------
def _gaussian_kernel_1d(ksize: int, sigma: float) -> np.ndarray:
    x = np.arange(ksize, dtype=np.float64) - (ksize - 1) / 2.0
    g = np.exp(-(x ** 2) / (2.0 * sigma ** 2))
    return (g / g.sum()).astype(np.float32)


def _reflect_conv_matrix(n: int, w: np.ndarray) -> np.ndarray:
    """A[i, j] s.t. (A @ v)[i] == 'same' correlation of v with w, reflect padding."""
    k = len(w)
    r = k // 2
    A = np.zeros((n, n), dtype=np.float32)
    for i in range(n):
        for t in range(k):
            j = i + t - r
            if j < 0:
                j = -j
            if j >= n:
                j = 2 * n - 2 - j
            A[i, j] += w[t]
    return A


# ----------------------------------------------------------------------------
# In-kernel helper: batched separable Gaussian filter on a stack of n images
# ----------------------------------------------------------------------------
def _gfilt_stack(stack, ah, aw_t, n, H, W):
    """stack: (n, H, W) -> (n, H, W), reflect-'same' Gaussian = A_h @ X @ A_w^T."""
    # H-axis filter: one batched matmul (MXU) instead of n tiny dots.
    ah_b = jnp.broadcast_to(ah, (n, H, H))
    t = jnp.einsum("nhk,nkw->nhw", ah_b, stack, preferred_element_type=jnp.float32)
    # W-axis filter: one big 2D matmul over all n*H rows.
    y = jnp.dot(t.reshape(n * H, W), aw_t, preferred_element_type=jnp.float32)
    return y.reshape(n, H, W)


# ----------------------------------------------------------------------------
# Kernel 1: left-image statistics (disparity independent; run ONCE, reused by
# every multiscale level)
# ----------------------------------------------------------------------------
def _left_stats_kernel(left_ref, ah_ref, awt_ref, mu2_ref, sig2_ref, *, C, H, W):
    left = left_ref[0]          # (C, H, W)
    ah = ah_ref[...]            # (H, H)
    aw_t = awt_ref[...]         # (W, W)

    stack = jnp.concatenate([left, left * left], axis=0)          # (2C, H, W)
    filt = _gfilt_stack(stack, ah, aw_t, 2 * C, H, W)
    mu2 = filt[:C]
    mu2_ref[0] = mu2
    sig2_ref[0] = filt[C:] - mu2 * mu2                            # sigma2_sq


def _left_stats_pallas(left, A_h, A_w_t):
    B, C, H, W = left.shape
    kernel = functools.partial(_left_stats_kernel, C=C, H=H, W=W)
    mu2, sigma2 = pl.pallas_call(
        kernel,
        out_shape=(jax.ShapeDtypeStruct((B, C, H, W), jnp.float32),
                   jax.ShapeDtypeStruct((B, C, H, W), jnp.float32)),
        grid=(B,),
        in_specs=[
            pl.BlockSpec((1, C, H, W), lambda b: (b, 0, 0, 0)),
            pl.BlockSpec((H, H), lambda b: (0, 0)),
            pl.BlockSpec((W, W), lambda b: (0, 0)),
        ],
        out_specs=(pl.BlockSpec((1, C, H, W), lambda b: (b, 0, 0, 0)),
                   pl.BlockSpec((1, C, H, W), lambda b: (b, 0, 0, 0))),
        compiler_params=pltpu.CompilerParams(dimension_semantics=("parallel",)),
    )(left, A_h, A_w_t)
    return mu2, sigma2


# ----------------------------------------------------------------------------
# Kernel 2: per-batch-element partial sums of all loss terms (per scale)
# ----------------------------------------------------------------------------
def _loss_kernel(disp_ref, left_ref, right_ref, mu2_ref, sig2_ref, ah_ref, awt_ref,
                 out_ref, *, C, H, W):
    d = disp_ref[0, 0]          # (H, W)
    left = left_ref[0]          # (C, H, W)
    right = right_ref[0]        # (C, H, W)
    mu2 = mu2_ref[0]            # (C, H, W)   precomputed gfilt(left)
    sigma2_sq = sig2_ref[0]     # (C, H, W)   precomputed gfilt(left^2) - mu2^2
    ah = ah_ref[...]            # (H, H)
    aw_t = awt_ref[...]         # (W, W)

    # -------- disparity warp: sample right at (x - d), bilinear, border clamp.
    # Folded interpolation weights: single (H,W,W) tensor, one contraction / ch.
    x = lax.broadcasted_iota(jnp.float32, (H, W), 1)
    p = x - d
    x0f = jnp.floor(p)
    frac = p - x0f
    x0 = x0f.astype(jnp.int32)
    i0 = jnp.clip(x0, 0, W - 1)
    i1 = jnp.clip(x0 + 1, 0, W - 1)

    k_idx = lax.broadcasted_iota(jnp.int32, (H, W, W), 2)
    oh0 = (i0[:, :, None] == k_idx).astype(jnp.float32)
    oh1 = (i1[:, :, None] == k_idx).astype(jnp.float32)
    wmat = oh0 * (1.0 - frac)[:, :, None] + oh1 * frac[:, :, None]   # (H, W, W)

    recon = jnp.stack(
        [jnp.sum(right[c][:, None, :] * wmat, axis=-1) for c in range(C)], axis=0)

    # -------- SmoothL1 (beta=1) partial sum
    diff = recon - left
    ad = jnp.abs(diff)
    s_l1 = jnp.sum(jnp.where(ad < 1.0, 0.5 * diff * diff, ad - 0.5))

    # -------- SSIM (kornia): batched Gaussian filtering of the 3 recon-dependent
    # images; left-only statistics come in precomputed.
    stack = jnp.concatenate([recon, recon * recon, recon * left], axis=0)  # (3C,H,W)
    filt = _gfilt_stack(stack, ah, aw_t, 3 * C, H, W)
    mu1 = filt[:C]
    sigma1_sq = filt[C:2 * C] - mu1 * mu1
    sigma12 = filt[2 * C:] - mu1 * mu2

    c1 = 0.01 ** 2
    c2 = 0.03 ** 2
    num = (2.0 * mu1 * mu2 + c1) * (2.0 * sigma12 + c2)
    den = (mu1 * mu1 + mu2 * mu2 + c1) * (sigma1_sq + sigma2_sq + c2)
    ssim_map = num / den
    s_ssim = jnp.sum(jnp.clip((1.0 - ssim_map) * 0.5, 0.0, 1.0))

    # -------- inverse-depth smoothness (on disparity normalized by its mean)
    nd = d / jnp.mean(d)
    nd_dx = nd[:, :-1] - nd[:, 1:]
    nd_dy = nd[:-1, :] - nd[1:, :]
    im_dx = left[:, :, :-1] - left[:, :, 1:]
    im_dy = left[:, :-1, :] - left[:, 1:, :]
    wx = jnp.exp(-jnp.mean(jnp.abs(im_dx), axis=0))
    wy = jnp.exp(-jnp.mean(jnp.abs(im_dy), axis=0))
    s_sx = jnp.sum(jnp.abs(nd_dx * wx))
    s_sy = jnp.sum(jnp.abs(nd_dy * wy))

    # -------- pack the 4 partial sums into one lane-dense (8, 128) tile
    row = lax.broadcasted_iota(jnp.int32, (8, 128), 0)
    tile = jnp.where(row == 0, s_l1,
           jnp.where(row == 1, s_ssim,
           jnp.where(row == 2, s_sx, s_sy)))
    out_ref[0] = tile.astype(jnp.float32)


def _loss_sums_pallas(disp, left, right, mu2, sigma2, A_h, A_w_t):
    """Returns (4,) f32: [sum_smoothl1, sum_ssim_loss, sum_smooth_x, sum_smooth_y]."""
    B, C, H, W = left.shape
    kernel = functools.partial(_loss_kernel, C=C, H=H, W=W)
    out = pl.pallas_call(
        kernel,
        out_shape=jax.ShapeDtypeStruct((B, 8, 128), jnp.float32),
        grid=(B,),
        in_specs=[
            pl.BlockSpec((1, 1, H, W), lambda b: (b, 0, 0, 0)),   # disparity
            pl.BlockSpec((1, C, H, W), lambda b: (b, 0, 0, 0)),   # left
            pl.BlockSpec((1, C, H, W), lambda b: (b, 0, 0, 0)),   # right
            pl.BlockSpec((1, C, H, W), lambda b: (b, 0, 0, 0)),   # mu2 (hoisted)
            pl.BlockSpec((1, C, H, W), lambda b: (b, 0, 0, 0)),   # sigma2_sq (hoisted)
            pl.BlockSpec((H, H), lambda b: (0, 0)),               # A_h (resident: index const)
            pl.BlockSpec((W, W), lambda b: (0, 0)),               # A_w^T (resident)
        ],
        out_specs=pl.BlockSpec((1, 8, 128), lambda b: (b, 0, 0)),
        compiler_params=pltpu.CompilerParams(dimension_semantics=("parallel",)),
    )(disp, left, right, mu2, sigma2, A_h, A_w_t)
    return jnp.sum(out[:, :4, 0], axis=0)


# ----------------------------------------------------------------------------
# Module forward (glue around the kernels)
# ----------------------------------------------------------------------------
def unsupervised_disparity_loss_multiscale(
    disparity_scales,
    left,
    right,
    *,
    photometric_weight=1.0,
    photometric_alpha=0.85,
    smoothness_weight=0.5,
    ssim_window=11,
    multiscale_weights=(1.0,),
):
    assert isinstance(disparity_scales, tuple)
    assert len(multiscale_weights) == len(disparity_scales)
    # stats is None in this synthetic setup -> no denormalize.

    left = left.astype(jnp.float32)
    right = right.astype(jnp.float32)
    B, C, H, W = left.shape

    g1d = _gaussian_kernel_1d(ssim_window, 1.5)
    A_h = jnp.asarray(_reflect_conv_matrix(H, g1d))
    A_w_t = jnp.asarray(_reflect_conv_matrix(W, g1d).T)

    # Left-only SSIM statistics do not depend on disparity: compute once,
    # reuse for every multiscale level.
    mu2, sigma2 = _left_stats_pallas(left, A_h, A_w_t)

    loss = jnp.float32(0.0)
    for i, disparity in enumerate(disparity_scales):
        scale = 2 ** i
        if multiscale_weights[i] == 0:
            continue
        if i > 0:
            b, c1_, h, w = disparity.shape
            disparity = jax.image.resize(
                disparity, (b, c1_, h * scale, w * scale), method="bilinear"
            ) * scale

        sums = _loss_sums_pallas(disparity.astype(jnp.float32),
                                 left, right, mu2, sigma2, A_h, A_w_t)
        n_px = B * C * H * W

        photometric_loss = jnp.float32(0.0)
        if photometric_weight != 0:
            loss_ph = jnp.float32(0.0)
            loss_ssim = jnp.float32(0.0)
            if photometric_alpha != 1:
                loss_ph = sums[0] / n_px                 # SmoothL1 mean
            if photometric_alpha != 0:
                loss_ssim = sums[1] / n_px               # SSIMLoss mean
            photometric_loss = (photometric_alpha * loss_ssim
                                + (1.0 - photometric_alpha) * loss_ph)

        smoothness_loss = jnp.float32(0.0)
        if smoothness_weight != 0:
            mean_x = sums[2] / (B * 1 * H * (W - 1))
            mean_y = sums[3] / (B * 1 * (H - 1) * W)
            smoothness_loss = (mean_x + mean_y) / scale

        loss = loss + (photometric_weight * photometric_loss
                       + smoothness_weight * smoothness_loss) * multiscale_weights[i]
    return loss


if __name__ == "__main__":
    key = jax.random.PRNGKey(0)
    k1, k2, k3, k4 = jax.random.split(key, 4)

    B, C, H, W = 2, 3, 16, 16
    left = jax.random.uniform(k1, (B, C, H, W), jnp.float32)
    right = jax.random.uniform(k2, (B, C, H, W), jnp.float32)
    # two disparity scales: full res and half res (positive disparities)
    disp0 = jax.random.uniform(k3, (B, 1, H, W), jnp.float32) * 3.0 + 0.1
    disp1 = jax.random.uniform(k4, (B, 1, H // 2, W // 2), jnp.float32) * 1.5 + 0.1

    loss = unsupervised_disparity_loss_multiscale(
        (disp0, disp1), left, right, multiscale_weights=(1.0, 0.5)
    )
    jax.block_until_ready(loss)
    assert jnp.isfinite(loss)
    print("KERNEL_OK")
</pallas_src>

<mosaic_0001>
module attributes {stable_mosaic.version = 11 : i64} {
  func.func @_left_stats_kernel(%arg0: i32, %arg1: memref<1x3x16x16xf32, #tpu.memory_space<vmem>>, %arg2: memref<16x16xf32, #tpu.memory_space<vmem>>, %arg3: memref<16x16xf32, #tpu.memory_space<vmem>>, %arg4: memref<1x3x16x16xf32, #tpu.memory_space<vmem>>, %arg5: memref<1x3x16x16xf32, #tpu.memory_space<vmem>>) attributes {dimension_semantics = [#tpu.dimension_semantics<parallel>], iteration_bounds = array<i64: 2>, scalar_prefetch = 0 : i64, scratch_operands = 0 : i64, tpu.core_type = #tpu.core_type<tc>, window_params = [{transform_indices = @transform_0, window_bounds = array<i64: 1, 3, 16, 16>}, {pipeline_mode = #tpu.pipeline_mode<synchronous>, transform_indices = @transform_1, window_bounds = array<i64: 16, 16>}, {pipeline_mode = #tpu.pipeline_mode<synchronous>, transform_indices = @transform_2, window_bounds = array<i64: 16, 16>}, {transform_indices = @transform_3, window_bounds = array<i64: 1, 3, 16, 16>}, {transform_indices = @transform_4, window_bounds = array<i64: 1, 3, 16, 16>}]} {
    %c0 = arith.constant 0 : index
    %c0_0 = arith.constant 0 : index
    %c0_1 = arith.constant 0 : index
    %c0_2 = arith.constant 0 : index
    %0 = vector.load %arg1[%c0, %c0_0, %c0_1, %c0_2] : memref<1x3x16x16xf32, #tpu.memory_space<vmem>>, vector<1x3x16x16xf32>
    %1 = vector.shape_cast %0 : vector<1x3x16x16xf32> to vector<3x16x16xf32>
    %c0_3 = arith.constant 0 : index
    %c0_4 = arith.constant 0 : index
    %2 = vector.load %arg2[%c0_3, %c0_4] : memref<16x16xf32, #tpu.memory_space<vmem>>, vector<16x16xf32>
    %c0_5 = arith.constant 0 : index
    %c0_6 = arith.constant 0 : index
    %3 = vector.load %arg3[%c0_5, %c0_6] : memref<16x16xf32, #tpu.memory_space<vmem>>, vector<16x16xf32>
    %4 = arith.mulf %1, %1 : vector<3x16x16xf32>
    %5 = tpu.concatenate %1, %4 in 0 : vector<3x16x16xf32>, vector<3x16x16xf32> -> vector<6x16x16xf32>
    %6 = vector.shape_cast %2 : vector<16x16xf32> to vector<1x16x16xf32>
    %7 = vector.broadcast %6 : vector<1x16x16xf32> to vector<6x16x16xf32>
    "tpu.trace_start"() <{level = 10 : i32, message = "nhk,nkw->nhw"}> : () -> ()
    %cst = arith.constant dense<0.000000e+00> : vector<6x16x16xf32>
    %8 = tpu.matmul %7, %5, %cst {dimension_numbers = #tpu.dot_dimension_numbers<[2], [1], [1], [2], [0, 0, 0, 1, 1, 2], [0], [0]>} : vector<6x16x16xf32>, vector<6x16x16xf32>, vector<6x16x16xf32> -> vector<6x16x16xf32>
    "tpu.trace_stop"() : () -> ()
    %9 = vector.shape_cast %8 : vector<6x16x16xf32> to vector<96x16xf32>
    %cst_7 = arith.constant dense<0.000000e+00> : vector<96x16xf32>
    %10 = tpu.matmul %9, %3, %cst_7 {dimension_numbers = #tpu.dot_dimension_numbers<[1], [0], [0], [1], [0, 0, 1, 1], [], []>} : vector<96x16xf32>, vector<16x16xf32>, vector<96x16xf32> -> vector<96x16xf32>
    %11 = vector.shape_cast %10 : vector<96x16xf32> to vector<6x16x16xf32>
    %12 = vector.extract_strided_slice %11 {offsets = [0, 0, 0], sizes = [3, 16, 16], strides = [1, 1, 1]} : vector<6x16x16xf32> to vector<3x16x16xf32>
    %c0_8 = arith.constant 0 : index
    %c0_9 = arith.constant 0 : index
    %c0_10 = arith.constant 0 : index
    %c0_11 = arith.constant 0 : index
    %13 = vector.load %arg4[%c0_8, %c0_9, %c0_10, %c0_11] : memref<1x3x16x16xf32, #tpu.memory_space<vmem>>, vector<1x3x16x16xf32>
    %14 = vector.shape_cast %13 : vector<1x3x16x16xf32> to vector<3x16x16xf32>
    %15 = vector.shape_cast %12 : vector<3x16x16xf32> to vector<1x3x16x16xf32>
    tpu.vector_store %arg4[%c0_8, %c0_9, %c0_10, %c0_11], %15 {strides = array<i32>} : memref<1x3x16x16xf32, #tpu.memory_space<vmem>>, vector<1x3x16x16xf32>,
    %16 = vector.extract_strided_slice %11 {offsets = [3, 0, 0], sizes = [3, 16, 16], strides = [1, 1, 1]} : vector<6x16x16xf32> to vector<3x16x16xf32>
    %17 = arith.mulf %12, %12 : vector<3x16x16xf32>
    %18 = arith.subf %16, %17 : vector<3x16x16xf32>
    %c0_12 = arith.constant 0 : index
    %c0_13 = arith.constant 0 : index
    %c0_14 = arith.constant 0 : index
    %c0_15 = arith.constant 0 : index
    %19 = vector.load %arg5[%c0_12, %c0_13, %c0_14, %c0_15] : memref<1x3x16x16xf32, #tpu.memory_space<vmem>>, vector<1x3x16x16xf32>
    %20 = vector.shape_cast %19 : vector<1x3x16x16xf32> to vector<3x16x16xf32>
    %21 = vector.shape_cast %18 : vector<3x16x16xf32> to vector<1x3x16x16xf32>
    tpu.vector_store %arg5[%c0_12, %c0_13, %c0_14, %c0_15], %21 {strides = array<i32>} : memref<1x3x16x16xf32, #tpu.memory_space<vmem>>, vector<1x3x16x16xf32>,
    return
  }
  func.func @transform_0(%arg0: i32) -> (i32, i32, i32, i32) {
    %c0_i32 = arith.constant 0 : i32
    %c0_i32_0 = arith.constant 0 : i32
    %c0_i32_1 = arith.constant 0 : i32
    %c0_i32_2 = arith.constant 0 : i32
    return %arg0, %c0_i32, %c0_i32_0, %c0_i32_1 : i32, i32, i32, i32
  }
  func.func @transform_1(%arg0: i32) -> (i32, i32) {
    %c0_i32 = arith.constant 0 : i32
    %c0_i32_0 = arith.constant 0 : i32
    %c0_i32_1 = arith.constant 0 : i32
    return %c0_i32, %c0_i32_0 : i32, i32
  }
  func.func @transform_2(%arg0: i32) -> (i32, i32) {
    %c0_i32 = arith.constant 0 : i32
    %c0_i32_0 = arith.constant 0 : i32
    %c0_i32_1 = arith.constant 0 : i32
    return %c0_i32, %c0_i32_0 : i32, i32
  }
  func.func @transform_3(%arg0: i32) -> (i32, i32, i32, i32) {
    %c0_i32 = arith.constant 0 : i32
    %c0_i32_0 = arith.constant 0 : i32
    %c0_i32_1 = arith.constant 0 : i32
    %c0_i32_2 = arith.constant 0 : i32
    return %arg0, %c0_i32, %c0_i32_0, %c0_i32_1 : i32, i32, i32, i32
  }
  func.func @transform_4(%arg0: i32) -> (i32, i32, i32, i32) {
    %c0_i32 = arith.constant 0 : i32
    %c0_i32_0 = arith.constant 0 : i32
    %c0_i32_1 = arith.constant 0 : i32
    %c0_i32_2 = arith.constant 0 : i32
    return %arg0, %c0_i32, %c0_i32_0, %c0_i32_1 : i32, i32, i32, i32
  }
}

</mosaic_0001>

<bundles_post_ra>
// kernel: tpu_custom_call.1
= control target key start
LH: loop header
LB: loop body
LE: loop exit
PB: predicated region body
PF: predicated region fallthrough
CT: control target
= control target key end

     0   :  { %10 = vsyncpa [#allocation3], 0  ;;  %s1270_s0 = inlined_call_operand.hbm [shape: f32[2,3,16,16], index: 0, kind: input, shape index: {}]   ;;  %s1271_s1 = inlined_call_operand.hbm [shape: f32[16,16], index: 1, kind: input, shape index: {}]   ;;  %s1272_s2 = inlined_call_operand.hbm [shape: f32[16,16], index: 2, kind: input, shape index: {}]   ;;  %s1273_s3 = inlined_call_operand.hbm [shape: f32[2,3,16,16], index: 3, kind: output, shape index: {0}]   ;;  %s1274_s4 = inlined_call_operand.hbm [shape: f32[2,3,16,16], index: 4, kind: output, shape index: {1}]  }
   0x1   :  { %12 = vsyncpa [#allocation3 + $0x1], 0 }
   0x2   :  { %13 = vsyncpa [#allocation6], 0 }
   0x3   :  { %14 = vsyncpa [#allocation4], 0 }
   0x4   :  { %16 = vsyncpa [#allocation4 + $0x1], 0 }
   0x5   :  { %17 = vsyncpa [#allocation10], 0 }
   0x6   :  { %19 = vsyncpa [#allocation10 + $0x1], 0  ;;  %s1046_s15 = smov 0   ;;  %s1048_s16 = smov 0  }
   0x7   :  { %s1050_s17 = smov 0   ;;  %s1052_s18 = smov 0  }
   0x8 LB: > { %s1067_s19 = sadd.s32 4294967295, %s1013_s18   ;;  %s699_s20 = sadd.s32 4294967294, %s1013_s18   ;;  %s1013_s18 = sphi %s1052_s18, %s1288_s18   ;;  %s1009_s17 = sphi %s1050_s17, %s1287_s17   ;;  %s1005_s16 = sphi %s1048_s16, %s1286_s16   ;;  %s1001_s15 = sphi %s1046_s15, %s1285_s15  }
   0x9   : > { %p45_p0 = scmp.ne.s32.totalorder %s1005_s16, %s1001_s15  ;;  %p46_p1 = scmp.eq.s32.totalorder %s1067_s19, 0 }
   0xa   : > { %p111_p2 = scmp.eq.s32.totalorder %s1067_s19, 1  ;;  %p117_p3 = scmp.eq.s32.totalorder %s699_s20, 1 }
   0xb   : > { %p1076_p4 = por %p46_p1, %p45_p0  ;;  %p700_p5 = scmp.ge.s32.totalorder %s1013_s18, 1 }
   0xc   : > { %p1081_p6 = por %p117_p3, %p45_p0  ;;  %p150_p7 = scmp.lt.s32.totalorder %s1013_s18, 3 }
   0xd   : > { %s161_s25 = sshll.u32 %s1271_s1, 4  ;;  %s1015_s27 = smov [#allocation5]   ;;  %s162_s25 = int_to_ptr.hbm [resolvable:$true] %s161_s25 }
   0xe   : > { %p1089_p8 = pnand %p700_p5, %p150_p7  ;;  %s163_s28 = sshll.u32 %s1015_s27, 4  ;;  %s164_s28 = int_to_ptr.vmem [resolvable:$true] %s163_s28 }
   0xf   : > { %s175_s5 = sshll.u32 %s1272_s2, 4  ;;  %s1275_s6 = smov 128   ;;  %s176_s5 = int_to_ptr.hbm [resolvable:$true] %s175_s5 }
  0x10   : > { %p759_p9 = pneg %p1089_p8  ;;  %s1276_s7 = smov 8  }
  0x11   : > { %s1018_s8 = smov [#allocation7]   ;;  %s1108_s10 = sadd.s32 1, %s1013_s18  }
  0x12   : > { %p760_p10 = pnand %p759_p9, %p46_p1  ;;  %s177_s9 = sshll.u32 %s1018_s8, 4  ;;  %s178_s9 = int_to_ptr.vmem [resolvable:$true] %s177_s9 }
  0x13   : > { %s32_s11 = sadd.s32 1, %s1009_s17  ;;  %s29_s12 = ssub.s32 %s1013_s18, %s1108_s10 }
  0x14   : > { %762 = dma.hbm_to_vmem [thread:$0]  (!%p760_p10), %s162_s25, 256, %s164_s28, [#allocation6], %s1275_s6, %s1275_s6, %s1276_s7  }
  0x15   : > { %765 = dma.hbm_to_vmem [thread:$0]  (!%p760_p10), %s176_s5, 256, %s178_s9, [#allocation6], %s1275_s6, %s1275_s6, %s1276_s7  }
  0x16   : > { %p39_p12 = scmp.ne.s32.totalorder %s1009_s17, %s1005_s16  ;;  %p30_p13 = scmp.eq.s32.totalorder %s29_s12, 0 }
  0x17   : > { %p40_p0 = scmp.eq.s32.totalorder %s1013_s18, 0  ;;  %p779_p5 = scmp.lt.s32.totalorder %s1013_s18, 2 }
  0x18   : > { %p1118_p3 = por %p111_p2, %p39_p12  ;;  %s191_s20 = sand.u32 1, %s1009_s17  }
  0x19   : > { %s1124_s14 = scalar_select %p30_p13, %s1009_s17, %s32_s11  }
  0x1a   : > { %p41_p7 = por %p40_p0, %p39_p12  ;;  %s740_s23 = smul.u32 48, %s191_s20 }
  0x1b   : > { %s741_s24 = smul.u32 48, %s1013_s18  ;;  %s192_s9 = scalar_lea.sflag [#allocation3], %s191_s20 }
  0x1c   : > { %p1128_p9 = pnand %p779_p5, %p41_p7  ;;  %s195_s30 = scalar_lea.vmem [#allocation2], %s740_s23 }
  0x1d   : > { %s200_s29 = scalar_lea.hbm %s1270_s0, %s741_s24  ;;  %s203_s5 = sshll.u32 %s195_s30, 4  ;;  %s204_s5 = int_to_ptr.vmem [resolvable:$true] %s203_s5 }
  0x1e   : > { %s201_s8 = sshll.u32 %s200_s29, 4  ;;  %p885_p10 = pneg %p1128_p9  ;;  %s202_s8 = int_to_ptr.hbm [resolvable:$true] %s201_s8 }
  0x1f   : > { %s881_s11 = sshra.s32 %s202_s8, 4  ;;  %s888_s27 = scalar_lea.hbm %s1270_s0, 96  ;;  %s882_s11 = int_to_ptr.hbm [resolvable:$true] %s881_s11 }
  0x20   : > { %s883_s12 = scalar_lea.hbm %s882_s11, 48  ;;  %p889_p0 = scmp.lt.s32.totalorder %s882_s11, %s1270_s0 }
  0x21   : > { %p884_p2 = scmp.ne.s32.totalorder %s882_s11, %s883_s12  ;;  %p890_p5 = scmp.lt.s32.totalorder %s888_s27, %s883_s12 }
  0x23   : > { %p886_p12 = pnand %p885_p10, %p884_p2  ;;  %p891_p7 = por %p890_p5, %p889_p0 }
  0x25   : > { %p887_p13 = pneg %p886_p12 }
  0x27   : > { %p892_p11 = pnand %p891_p7, %p887_p13 }
  0x29   : > { %895 = shalt.err (!%p892_p11)
}
  0x2a   : > { %s1282_s20 = smov 8   ;;  %s1283_s23 = smov 128  }
  0x2b   : > { %769 = dma.hbm_to_vmem [thread:$0]  (!%p1128_p9), %s202_s8, 768, %s204_s5, %s192_s9, %s1283_s23, %s1283_s23, %s1282_s20  }
  0x2c   : > { %215 = sbr.rel (%p1089_p8) target bundleno = 375 (0x177), region = 32  ;;  %s1151_s6 = sand.u32 (!%p1089_p8), 1, %s1005_s16  }
  0x2d   : > { %s1154_s7 = smul.u32 (!%p1089_p8), 48, %s1151_s6  ;;  %s218_s29 = scalar_lea.sflag (!%p1089_p8), [#allocation3], %s1151_s6 }
  0x2f   : > { %s221_s30 = scalar_lea.vmem (!%p1089_p8), [#allocation2], %s1154_s7 }
  0x31   : > { %984 = dma.done.wait (%p1076_p4), %s218_s29, 768  }
  0x32   : > { %986 = vsyncadd (%p1076_p4), %s218_s29, 4294966528 }
  0x33   : > { %988 = dma.done.wait (%p46_p1), [#allocation6], 512  }
  0x34   : > { %990 = vsyncadd (%p46_p1), [#allocation6], 4294966784  ;;  %v263_v0 = vld [vmem:[%s221_s30 + $0x8] sm:$0xff]  ;;  %v262_v1 = vld [vmem:[%s221_s30] sm:$0xff]  ;;  %vm278_vm0 = vcmask 130048   ;;  %s254_s21 = scalar_lea.vmem [#allocation8], %s1154_s7 }
  0x35   : > { %299 = vmatpush.msra.mxu0 %v263_v0  ;;  %v268_v2 = vld [vmem:[#allocation5] sm:$0xff]  ;;  %v273_v3 = vmul.f32 %v263_v0, %v263_v0  ;;  %v265_v4 = vld [vmem:[%s221_s30 + $0x18] sm:$0xff]  ;;  %v272_v6 = vmul.f32 %v262_v1, %v262_v1  ;;  %v267_v8 = vld [vmem:[%s221_s30 + $0x28] sm:$0xff]  ;;  %s743_s26 = smul.u32 48, %s1067_s19  ;;  %s1203_s9 = scalar_lea.vmem [#allocation9], %s1154_s7 }
  0x36   : > { %v264_v5 = vld [vmem:[%s221_s30 + $0x10] sm:$0xff]  ;;  %322 = vmatpush.msra.mxu1 %v265_v4  ;;  %v275_v7 = vmul.f32 %v265_v4, %v265_v4  ;;  %v277_v9 = vmul.f32 %v267_v8, %v267_v8  ;;  %v266_v10 = vld [vmem:[%s221_s30 + $0x20] sm:$0xff]  ;;  %345 = vmatpush.msra.mxu2 %v267_v8  ;;  %v269_v12 = vld [vmem:[#allocation5 + $0x8] sm:$0xff]  ;;  %s554_s11 = sshll.u32 %s254_s21, 4  ;;  %s537_s27 = scalar_lea.sflag [#allocation4], %s1151_s6  ;;  %s555_s11 = int_to_ptr.vmem [resolvable:$true] %s554_s11 }
  0x37   : > { %300 = vmatpush.msra.mxu0 %v262_v1  ;;  %v274_v11 = vmul.f32 %v264_v5, %v264_v5  ;;  %v276_v13 = vmul.f32 %v266_v10, %v266_v10  ;;  %v271_v14 = vld [vmem:[#allocation7 + $0x8] sm:$0xff]  ;;  %v270_v15 = vld [vmem:[#allocation7] sm:$0xff]  ;;  %s553_s8 = scalar_lea.hbm %s1273_s3, %s743_s26  ;;  %s931_s7 = scalar_lea.hbm %s1273_s3, 96 }
  0x38   : > { %708 = vmatmul.msk.f32.vlgmr.msra.gmra.mxu0 %vm278_vm0, %v268_v2  ;;  %323 = vmatpush.msra.mxu1 %v264_v5  ;;  %s556_s12 = sshll.u32 %s553_s8, 4  ;;  %s557_s12 = int_to_ptr.hbm [resolvable:$true] %s556_s12 }
  0x39   : > { %368 = vmatpush.msrb.mxu0 %v273_v3  ;;  %710 = vmatmul.msk.f32.vlgmr.msra.gmra.mxu1 %vm278_vm0, %v268_v2  ;;  %s925_s28 = sshra.s32 %s557_s12, 4  ;;  %s926_s28 = int_to_ptr.hbm [resolvable:$true] %s925_s28 }
  0x3a   : > { %414 = vmatpush.msrb.mxu1 %v277_v9  ;;  %346 = vmatpush.msra.mxu2 %v266_v10  ;;  %s927_s24 = scalar_lea.hbm %s926_s28, 48  ;;  %p932_p11 = scmp.lt.s32.totalorder %s926_s28, %s1273_s3 }
  0x3b   : > { %369 = vmatpush.msrb.mxu0 %v272_v6  ;;  %712 = vmatmul.msk.f32.vlgmr.msra.gmra.mxu2 %vm278_vm0, %v268_v2  ;;  %p928_p1 = scmp.ne.s32.totalorder %s926_s28, %s927_s24  ;;  %p933_p9 = scmp.lt.s32.totalorder %s931_s7, %s927_s24 }
  0x3c   : > { %737 = vmatpush.msra.mxu3 %v271_v14  ;;  %415 = vmatpush.msrb.mxu1 %v276_v13 }
  0x3d   : > { %391 = vmatpush.msra.mxu0 %v275_v7  ;;  %736 = vmatpush.msrb.mxu2 %v271_v14  ;;  %p929_p4 = pnand %p928_p1, %p1118_p3  ;;  %p934_p2 = por %p933_p9, %p932_p11 }
  0x3e   : > { %473 = vmatpush.msra.mxu1 %v271_v14  ;;  %739 = vmatpush.msra.mxu3 %v270_v15 }
  0x3f   : > { %392 = vmatpush.msra.mxu0 %v274_v11  ;;  %738 = vmatpush.msrb.mxu2 %v270_v15  ;;  %p930_p8 = pneg %p929_p4 }
  0x40   : > { %709 = vmatmul.msk.f32.gmra.mxu0 %vm278_vm0, %v269_v12  ;;  %474 = vmatpush.msra.mxu1 %v270_v15 }
  0x41   : > { %711 = vmatmul.msk.f32.gmra.mxu1 %vm278_vm0, %v269_v12  ;;  %p935_p10 = pnand %p934_p2, %p930_p8 }
  0x43   : > { %713 = vmatmul.msk.f32.gmra.mxu2 %vm278_vm0, %v269_v12 }
  0x48   : > { %714 = vmatmul.msk.f32.vlgmr.msrb.gmra.mxu0 %vm278_vm0, %v268_v2 }
  0x49   : > { %718 = vmatmul.msk.f32.vlgmr.msrb.gmra.mxu1 %vm278_vm0, %v268_v2 }
  0x50   : > { %715 = vmatmul.msk.f32.gmra.mxu0 %vm278_vm0, %v269_v12 }
  0x51   : > { %719 = vmatmul.msk.f32.gmra.mxu1 %vm278_vm0, %v269_v12 }
  0x58   : > { %716 = vmatmul.msk.f32.vlgmr.msra.gmra.mxu0 %vm278_vm0, %v268_v2 }
  0x60   : > { %717 = vmatmul.msk.f32.gmra.mxu0 %vm278_vm0, %v269_v12 }
  0xb5   : > { %v302_v16 = vpop.f32.mrf.mxu0 }
  0xb6   : > { %720 = vmatmul.msk.f32.vlgmr.msra.gmra.mxu1 %vm278_vm0, %v302_v16  ;;  %v325_v17 = vpop.f32.mrf.mxu1 }
  0xb7   : > { %722 = vmatmul.msk.f32.vlgmr.msrb.gmra.mxu2 %vm278_vm0, %v325_v17 }
  0xbd   : > { %v305_v18 = vpop.f32.mrf.mxu0 }
  0xbe   : > { %721 = vmatmul.msk.f32.gmra.mxu1 %vm278_vm0, %v305_v18  ;;  %v328_v19 = vpop.f32.mrf.mxu1  ;;  %v348_v20 = vpop.f32.mrf.mxu2 }
  0xbf   : > { %723 = vmatmul.msk.f32.gmra.mxu2 %vm278_vm0, %v328_v19 }
  0xc5   : > { %v371_v21 = vpop.f32.mrf.mxu0 }
  0xc6   : > { %726 = vmatmul.msk.f32.vlgmr.msra.gmra.mxu3 %vm278_vm0, %v371_v21  ;;  %v351_v22 = vpop.f32.mrf.mxu2  ;;  %v417_v26 = vpop.f32.mrf.mxu1 }
  0xc7   : > { %724 = vmatmul.msk.f32.gmra.mxu2 %vm278_vm0, %v348_v20 }
  0xcd   : > { %v374_v23 = vpop.f32.mrf.mxu0 }
  0xce   : > { %727 = vmatmul.msk.f32.gmra.mxu3 %vm278_vm0, %v374_v23  ;;  %v420_v27 = vpop.f32.mrf.mxu1 }
  0xcf   : > { %725 = vmatmul.msk.f32.gmra.mxu2 %vm278_vm0, %v351_v22 }
  0xd5   : > { %v394_v24 = vpop.f32.mrf.mxu0 }
  0xd6   : > { %728 = vmatmul.msk.f32.gmra.mxu3 %vm278_vm0, %v394_v24 }
  0xdd   : > { %v397_v25 = vpop.f32.mrf.mxu0 }
  0xde   : > { %729 = vmatmul.msk.f32.gmra.mxu3 %vm278_vm0, %v397_v25 }
  0xe6   : > { %730 = vmatmul.msk.f32.gmra.mxu3 %vm278_vm0, %v417_v26 }
  0xee   : > { %731 = vmatmul.msk.f32.gmra.mxu3 %vm278_vm0, %v420_v27 }
 0x133   : > { %v476_v28 = vpop.f32.mrf.mxu1 }
 0x134   : > { %512 = vst.msk [vmem:[%s254_s21] sm:$0xff] %vm278_vm0, %v476_v28  ;;  %v518_v32 = vmul.f32 %v476_v28, %v476_v28 }
 0x13a   : > { %v482_v29 = vpop.f32.mrf.mxu2 }
 0x13b   : > { %v479_v30 = vpop.f32.mrf.mxu1  ;;  %514 = vst.msk [vmem:[%s254_s21 + $0x10] sm:$0xff] %vm278_vm0, %v482_v29 }
 0x13c   : > { %513 = vst.msk [vmem:[%s254_s21 + $0x8] sm:$0xff] %vm278_vm0, %v479_v30  ;;  %v519_v36 = vmul.f32 %v479_v30, %v479_v30 }
 0x142   : > { %v485_v31 = vpop.f32.mrf.mxu2 }
 0x143   : > { %515 = vst.msk [vmem:[%s254_s21 + $0x18] sm:$0xff] %vm278_vm0, %v485_v31 }
 0x149   : > { %v494_v33 = vpop.f32.mrf.mxu3 }
 0x14a   : > { %v524_v34 = vsub.f32 %v494_v33, %v518_v32  ;;  %v488_v35 = vpop.f32.mrf.mxu2 }
 0x14b   : > { %516 = vst.msk [vmem:[%s254_s21 + $0x20] sm:$0xff] %vm278_vm0, %v488_v35 }
 0x14c   : > { %530 = vst.msk [vmem:[%s1203_s9] sm:$0xff] %vm278_vm0, %v524_v34 }
 0x151   : > { %v497_v37 = vpop.f32.mrf.mxu3 }
 0x152   : > { %v525_v38 = vsub.f32 %v497_v37, %v519_v36  ;;  %v491_v39 = vpop.f32.mrf.mxu2 }
 0x153   : > { %517 = vst.msk [vmem:[%s254_s21 + $0x28] sm:$0xff] %vm278_vm0, %v491_v39 }
 0x154   : > { %531 = vst.msk [vmem:[%s1203_s9 + $0x8] sm:$0xff] %vm278_vm0, %v525_v38 }
 0x155   : > { %938 = shalt.err (!%p935_p10)
}
 0x156   : > { %s1019_s21 = smov 128   ;;  %s1020_s25 = smov 8   ;;  %v520_v40 = vmul.f32 %v482_v29, %v482_v29  ;;  %v521_v43 = vmul.f32 %v485_v31, %v485_v31  ;;  %v522_v46 = vmul.f32 %v488_v35, %v488_v35  ;;  %v523_v49 = vmul.f32 %v491_v39, %v491_v39 }
 0x157   : > { %755 = dma.vmem_to_hbm [thread:$0]  (%p1118_p3), %s555_s11, 768, %s557_s12, %s537_s27, %s1019_s21, %s1019_s21, %s1020_s25  }
 0x158   : > { %s570_s11 = scalar_lea.hbm %s1274_s4, %s743_s26  ;;  %s571_s12 = sshll.u32 %s1203_s9, 4  ;;  %s572_s12 = int_to_ptr.vmem [resolvable:$true] %s571_s12 }
 0x159   : > { %v500_v41 = vpop.f32.mrf.mxu3  ;;  %s573_s27 = sshll.u32 %s570_s11, 4  ;;  %s542_s28 = scalar_lea.sflag [#allocation10], %s1151_s6  ;;  %s574_s27 = int_to_ptr.hbm [resolvable:$true] %s573_s27 }
 0x15a   : > { %v526_v42 = vsub.f32 %v500_v41, %v520_v40  ;;  %s953_s24 = sshra.s32 %s574_s27, 4  ;;  %s959_s26 = scalar_lea.hbm %s1274_s4, 96  ;;  %s954_s24 = int_to_ptr.hbm [resolvable:$true] %s953_s24 }
 0x15b   : > { %s955_s20 = scalar_lea.hbm %s954_s24, 48  ;;  %p960_p5 = scmp.lt.s32.totalorder %s954_s24, %s1274_s4 }
 0x15c   : > { %532 = vst.msk [vmem:[%s1203_s9 + $0x10] sm:$0xff] %vm278_vm0, %v526_v42  ;;  %p956_p12 = scmp.ne.s32.totalorder %s954_s24, %s955_s20  ;;  %p961_p7 = scmp.lt.s32.totalorder %s959_s26, %s955_s20 }
 0x15e   : > { %p957_p13 = pnand %p956_p12, %p1118_p3  ;;  %p962_p1 = por %p961_p7, %p960_p5 }
 0x160   : > { %p958_p0 = pneg %p957_p13 }
 0x161   : > { %v503_v44 = vpop.f32.mrf.mxu3 }
 0x162   : > { %v527_v45 = vsub.f32 %v503_v44, %v521_v43  ;;  %p963_p4 = pnand %p962_p1, %p958_p0 }
 0x164   : > { %533 = vst.msk [vmem:[%s1203_s9 + $0x18] sm:$0xff] %vm278_vm0, %v527_v45 }
 0x169   : > { %v506_v47 = vpop.f32.mrf.mxu3 }
 0x16a   : > { %v528_v48 = vsub.f32 %v506_v47, %v522_v46 }
 0x16c   : > { %534 = vst.msk [vmem:[%s1203_s9 + $0x20] sm:$0xff] %vm278_vm0, %v528_v48 }
 0x171   : > { %v509_v50 = vpop.f32.mrf.mxu3 }
 0x172   : > { %v529_v51 = vsub.f32 %v509_v50, %v523_v49 }
 0x174   : > { %535 = vst.msk [vmem:[%s1203_s9 + $0x28] sm:$0xff] %vm278_vm0, %v529_v51 }
 0x175   : > { %966 = shalt.err (!%p963_p4)
}
 0x176   : > { %756 = dma.vmem_to_hbm [thread:$0]  (%p1118_p3), %s572_s12, 768, %s574_s27, %s542_s28, %s1019_s21, %s1019_s21, %s1020_s25  }
 0x177 PF: > { %s588_s6 = sand.u32 1, %s1001_s15   ;;  %p1284_p8 = scmp.ge.s32.totalorder %s1013_s18, 2 }
 0x178   : > { %s589_s9 = scalar_lea.sflag [#allocation4], %s588_s6 }
 0x179   : > { %p771_p11 = pnand %p1284_p8, %p1081_p6 }
 0x17b   : > { %p772_p9 = pneg %p771_p11 }
 0x17d   : > { %992 = dma.done.wait (%p772_p9), %s589_s9, 768  }
 0x17e   : > { %994 = vsyncadd (%p772_p9), %s589_s9, 4294966528  ;;  %s599_s30 = scalar_lea.sflag [#allocation10], %s588_s6 }
 0x17f   : > { %996 = dma.done.wait (%p772_p9), %s599_s30, 768  }
 0x180   : > { %998 = vsyncadd (%p772_p9), %s599_s30, 4294966528  ;;  %p22_p3 = scmp.ge.s32.totalorder %s1108_s10, 4   ;;  %s1285_s15 = smov %s1005_s16 }
 0x181   : > { %s1286_s16 = smov %s1009_s17  ;;  %s1287_s17 = smov %s1124_s14 }
 0x182   : > { %s1288_s18 = smov %s1108_s10  ;;  %24 = sbr.rel (!%p22_p3) target bundleno = 8 (0x8), region = 102 }
 0x187   :  { %605 = vsyncpa [#allocation3], 1 }
 0x188   :  { %607 = vsyncpa [#allocation3 + $0x1], 1 }
 0x189   :  { %608 = vsyncpa [#allocation6], 1 }
 0x18a   :  { %609 = vsyncpa [#allocation4], 1 }
 0x18b   :  { %611 = vsyncpa [#allocation4 + $0x1], 1 }
 0x18c   :  { %612 = vsyncpa [#allocation10], 1 }
 0x18d   :  { %614 = vsyncpa [#allocation10 + $0x1], 1 }

</bundles_post_ra>
